<compile_context>
chip_gen: v6e
topology: v6e:2x2x1
jax: 0.10.0
libtpu: 0.0.40
codegen_flags: <defaults>
</compile_context>

<pallas_src>
import jax
import jax.numpy as jnp
from jax.experimental import pallas as pl
from jax.experimental.pallas import tpu as pltpu


def _vmem_capacity_bytes():
    """Physical VMEM per TensorCore; conservative 64 MiB fallback (v7x size)."""
    try:
        return int(pltpu.get_tpu_info().vmem_capacity_bytes)
    except Exception:
        return 64 * 1024 * 1024


def _mlp_kernel(x_ref, w1_ref, b1_ref, w2_ref, b2_ref, o_ref, h_acc):
    """grid = (M tiles, K tiles over D_in); h_acc is the f32 accumulator for
    the first matmul.  Bias/ReLU/second matmul run once on the last K step."""
    k = pl.program_id(1)

    @pl.when(k == 0)
    def _():
        h_acc[...] = jnp.zeros_like(h_acc)

    # First linear: accumulate partial products over the D_in (K) axis.
    # x may arrive in f32 and is cast on the VPU here (free filler under MXU
    # slack); MXU accumulates in f32 via preferred_element_type.
    h_acc[...] += jnp.dot(x_ref[...].astype(w1_ref.dtype), w1_ref[...],
                          preferred_element_type=jnp.float32)

    @pl.when(k == pl.num_programs(1) - 1)
    def _():
        # bias + clamp(min=0) (ReLU) in f32; padded H lanes stay exactly 0.
        h = jnp.maximum(h_acc[...] + b1_ref[...], 0.0)
        # Second linear; padded H rows of w2t are 0, padded D_out lanes are
        # sliced off in the wrapper.
        y = jnp.dot(h.astype(w2_ref.dtype), w2_ref[...],
                    preferred_element_type=jnp.float32)
        o_ref[...] = (y + b2_ref[...]).astype(o_ref.dtype)


def _build_call(N, Kp, Hp, Dp, tile_m, tile_k, x_dtype, compute_dtype,
                single_buffer_resident):
    grid_m = pl.cdiv(N, tile_m)
    grid_k = pl.cdiv(Kp, tile_k)
    grid = (grid_m, grid_k)

    # Truly grid-invariant operands (constant index_map): single buffer.
    res_kwargs = dict(pipeline_mode=pl.Buffered(1)) if single_buffer_resident else {}
    # w1t streams over the K axis -> keep double-buffering so its DMA hides
    # behind the previous step's MXU work; it only becomes resident (and thus
    # worth single-buffering) when the K grid collapses to 1.
    w1_kwargs = res_kwargs if grid_k == 1 else {}

    in_specs = [
        pl.BlockSpec((tile_m, tile_k), lambda i, k: (i, k)),                 # x
        pl.BlockSpec((tile_k, Hp),     lambda i, k: (k, 0), **w1_kwargs),    # w1t
        pl.BlockSpec((1, Hp),          lambda i, k: (0, 0), **res_kwargs),   # b1
        pl.BlockSpec((Hp, Dp),         lambda i, k: (0, 0), **res_kwargs),   # w2t
        pl.BlockSpec((1, Dp),          lambda i, k: (0, 0), **res_kwargs),   # b2
    ]
    # Lane-dense output (Dp is a multiple of 128) -> unmasked vst.
    out_specs = pl.BlockSpec((tile_m, Dp), lambda i, k: (i, 0))

    c_item = jnp.dtype(compute_dtype).itemsize
    x_item = jnp.dtype(x_dtype).itemsize
    nbuf_res = 1 if single_buffer_resident else 2
    nbuf_w1 = nbuf_res if grid_k == 1 else 2
    vmem_est = (
        2 * tile_m * tile_k * x_item              # x (double-buffered)
        + nbuf_w1 * tile_k * Hp * c_item          # w1t
        + nbuf_res * Hp * Dp * c_item             # w2t
        + nbuf_res * (Hp + Dp) * 4                # b1, b2 (f32)
        + 2 * tile_m * Dp * 4                     # out (f32, 2 bufs)
        + tile_m * Hp * 4                         # h accumulator scratch
    )
    # Generation-aware scoped-VMEM limit: use most of the chip's VMEM but keep
    # explicit headroom for Mosaic internal scratch (matters most on v7x,
    # where 64 MiB is the whole per-TC VMEM).
    vmem_cap = _vmem_capacity_bytes()
    vmem_limit = int(min(0.85 * vmem_cap, max(32 * 1024 * 1024, 2 * vmem_est)))
    vmem_limit = max(vmem_limit, int(1.25 * vmem_est))

    # w1t is re-streamed from HBM for every M tile whenever the K grid > 1.
    w1_streams = grid_m if grid_k > 1 else 1
    cost = pl.CostEstimate(
        flops=2 * N * (Kp * Hp + Hp * Dp),
        transcendentals=0,
        bytes_accessed=int(
            N * Kp * x_item
            + w1_streams * Kp * Hp * c_item
            + Hp * Dp * c_item
            + (Hp + Dp) * 4
            + N * Dp * 4),
    )

    return pl.pallas_call(
        _mlp_kernel,
        out_shape=jax.ShapeDtypeStruct((N, Dp), jnp.float32),
        grid_spec=pltpu.PrefetchScalarGridSpec(
            num_scalar_prefetch=0,
            grid=grid,
            in_specs=in_specs,
            out_specs=out_specs,
            scratch_shapes=[pltpu.VMEM((tile_m, Hp), jnp.float32)],
        ),
        compiler_params=pltpu.CompilerParams(
            dimension_semantics=("parallel", "arbitrary"),
            vmem_limit_bytes=vmem_limit,
        ),
        cost_estimate=cost,
    )


def two_layer_net(x, w1t, b1, w2t, b2, *, tile_m=None, tile_k=None,
                  compute_dtype=jnp.bfloat16):
    """relu(x @ w1t + b1) @ w2t + b2, matching TwoLayerNet.forward.

    Matmul inputs are cast to `compute_dtype` (bf16 by default for MXU
    throughput) with f32 accumulation; pass compute_dtype=jnp.float32 for
    f32 semantics.  Biases / ReLU are always f32.
    tile_m / tile_k = None -> chosen automatically (generation-aware).
    """
    N, D_in = x.shape
    H = w1t.shape[1]
    D_out = w2t.shape[1]
    c_item = jnp.dtype(compute_dtype).itemsize
    vmem_cap = _vmem_capacity_bytes()

    # Lane-dense padding of the hidden and output feature axes (see header).
    Hp = 128 * pl.cdiv(H, 128)
    Dp = 128 * pl.cdiv(D_out, 128)

    # Row tile: large (fewer grid steps, full MXU M dim), but keep >=2 M tiles
    # when possible so v7x's second TensorCore gets work.
    if tile_m is None:
        tile_m = 256
        if N <= tile_m:
            tile_m = N // 2 if (N >= 16 and N % 16 == 0) else N
    else:
        tile_m = min(tile_m, N)
    # NOTE: when N % tile_m != 0 the last M block reads out-of-bounds rows of
    # x; results land only in rows sliced off by the caller's view of [0, N),
    # which is benign because rows are independent (no reduction over M).

    # K tile over D_in: collapse the K grid to 1 (w1t fully resident, no
    # accumulator loop, no per-M-tile re-streaming) whenever w1t fits a
    # conservative slice of this generation's VMEM; otherwise stream 512-wide.
    if tile_k is None:
        if D_in * Hp * c_item <= int(0.25 * vmem_cap):
            tile_k = D_in
        else:
            tile_k = min(512, D_in)
    else:
        tile_k = min(tile_k, D_in)
    Kp = tile_k * pl.cdiv(D_in, tile_k)

    # Zero-padded, pre-cast parameters (padding keeps the math exact).
    w1t_p = w1t.astype(compute_dtype)
    if Hp != H:
        w1t_p = jnp.pad(w1t_p, ((0, 0), (0, Hp - H)))
    w2t_p = jnp.zeros((Hp, Dp), compute_dtype).at[:H, :D_out].set(
        w2t.astype(compute_dtype))
    b1_p = jnp.zeros((1, Hp), jnp.float32).at[0, :H].set(b1.astype(jnp.float32))
    b2_p = jnp.zeros((1, Dp), jnp.float32).at[0, :D_out].set(b2.astype(jnp.float32))

    x_in = x
    if Kp != D_in:
        # Pad+cast fused in one wrapper op when K padding is required.
        x_in = jnp.pad(x, ((0, 0), (0, Kp - D_in))).astype(compute_dtype)
    # else: pass x in its original dtype and cast on the VPU inside the kernel.

    args = (x_in, w1t_p, b1_p, w2t_p, b2_p)
    try:
        fn = _build_call(N, Kp, Hp, Dp, tile_m, tile_k, x_in.dtype,
                         compute_dtype, single_buffer_resident=True)
        out = fn(*args)
    except (TypeError, NotImplementedError, pltpu.LoweringException):
        # pl.Buffered(1) on resident operands not supported on this jax/Mosaic
        # build -> fall back to default double-buffering (correct, more VMEM).
        fn = _build_call(N, Kp, Hp, Dp, tile_m, tile_k, x_in.dtype,
                         compute_dtype, single_buffer_resident=False)
        out = fn(*args)
    return out[:, :D_out]


if __name__ == "__main__":
    # Small shapes consistent with the module: N=64, D_in=256, H=32, D_out=16.
    N, D_in, H, D_out = 64, 256, 32, 16

    key = jax.random.PRNGKey(0)
    kx, kw1, kb1, kw2, kb2 = jax.random.split(key, 5)

    x = jax.random.normal(kx, (N, D_in), dtype=jnp.float32)
    # PyTorch Linear stores weight as (out, in); transpose for x @ W.T.
    w1 = jax.random.normal(kw1, (H, D_in), dtype=jnp.float32) * 0.1
    b1 = jax.random.normal(kb1, (H,), dtype=jnp.float32) * 0.1
    w2 = jax.random.normal(kw2, (D_out, H), dtype=jnp.float32) * 0.1
    b2 = jax.random.normal(kb2, (D_out,), dtype=jnp.float32) * 0.1

    # Pure-JAX f32 reference of the forward pass.
    y_ref = jnp.maximum(x @ w1.T + b1, 0.0) @ w2.T + b2

    # 1) f32 compute path (auto tiles: 2 M tiles, K grid collapsed to 1).
    y_f32 = jax.block_until_ready(
        two_layer_net(x, w1.T, b1, w2.T, b2, compute_dtype=jnp.float32))
    assert y_f32.shape == (N, D_out)
    assert jnp.allclose(y_f32, y_ref, atol=1e-3, rtol=1e-3)

    # 2) Fast bf16-MXU path, explicitly exercising the M grid (4 tiles) and
    #    the K accumulator (2 tiles).  Compare against a bf16-rounded ref.
    y_bf16 = jax.block_until_ready(
        two_layer_net(x, w1.T, b1, w2.T, b2, tile_m=16, tile_k=128))
    xb = x.astype(jnp.bfloat16).astype(jnp.float32)
    w1b = w1.astype(jnp.bfloat16).astype(jnp.float32)
    w2b = w2.astype(jnp.bfloat16).astype(jnp.float32)
    h_b = jnp.maximum(xb @ w1b.T + b1, 0.0)
    y_ref_bf16 = h_b.astype(jnp.bfloat16).astype(jnp.float32) @ w2b.T + b2
    assert y_bf16.shape == (N, D_out)
    assert jnp.allclose(y_bf16, y_ref_bf16, atol=2e-2, rtol=2e-2)

    print("KERNEL_OK")
</pallas_src>

<mosaic_0001>
module attributes {stable_mosaic.version = 11 : i64} {
  func.func @_mlp_kernel(%arg0: i32, %arg1: i32, %arg2: memref<32x256xf32, #tpu.memory_space<vmem>>, %arg3: memref<256x128xf32, #tpu.memory_space<vmem>>, %arg4: memref<1x128xf32, #tpu.memory_space<vmem>>, %arg5: memref<128x128xf32, #tpu.memory_space<vmem>>, %arg6: memref<1x128xf32, #tpu.memory_space<vmem>>, %arg7: memref<32x128xf32, #tpu.memory_space<vmem>>, %arg8: memref<32x128xf32, #tpu.memory_space<vmem>>) attributes {dimension_semantics = [#tpu.dimension_semantics<parallel>, #tpu.dimension_semantics<arbitrary>], iteration_bounds = array<i64: 2, 1>, scalar_prefetch = 0 : i64, scratch_operands = 1 : i64, tpu.core_type = #tpu.core_type<tc>, window_params = [{transform_indices = @transform_0, window_bounds = array<i64: 32, 256>}, {pipeline_mode = #tpu.pipeline_mode<synchronous>, transform_indices = @transform_1, window_bounds = array<i64: 256, 128>}, {pipeline_mode = #tpu.pipeline_mode<synchronous>, transform_indices = @transform_2, window_bounds = array<i64: 1, 128>}, {pipeline_mode = #tpu.pipeline_mode<synchronous>, transform_indices = @transform_3, window_bounds = array<i64: 128, 128>}, {pipeline_mode = #tpu.pipeline_mode<synchronous>, transform_indices = @transform_4, window_bounds = array<i64: 1, 128>}, {transform_indices = @transform_5, window_bounds = array<i64: 32, 128>}]} {
    %c0_i32 = arith.constant 0 : i32
    %0 = arith.cmpi eq, %arg1, %c0_i32 : i32
    %1 = arith.extui %0 : i1 to i32
    %c0_i32_0 = arith.constant 0 : i32
    %2 = arith.cmpi ne, %1, %c0_i32_0 : i32
    scf.if %2 {
      %cst_10 = arith.constant 0.000000e+00 : f32
      %12 = vector.broadcast %cst_10 : f32 to vector<32x128xf32>
      %c0_11 = arith.constant 0 : index
      %c0_12 = arith.constant 0 : index
      %13 = vector.load %arg8[%c0_11, %c0_12] : memref<32x128xf32, #tpu.memory_space<vmem>>, vector<32x128xf32>
      tpu.vector_store %arg8[%c0_11, %c0_12], %12 {strides = array<i32>} : memref<32x128xf32, #tpu.memory_space<vmem>>, vector<32x128xf32>,
    } else {
    }
    %c0 = arith.constant 0 : index
    %c0_1 = arith.constant 0 : index
    %3 = vector.load %arg8[%c0, %c0_1] : memref<32x128xf32, #tpu.memory_space<vmem>>, vector<32x128xf32>
    %c0_2 = arith.constant 0 : index
    %c0_3 = arith.constant 0 : index
    %4 = vector.load %arg2[%c0_2, %c0_3] : memref<32x256xf32, #tpu.memory_space<vmem>>, vector<32x256xf32>
    %c0_4 = arith.constant 0 : index
    %c0_5 = arith.constant 0 : index
    %5 = vector.load %arg3[%c0_4, %c0_5] : memref<256x128xf32, #tpu.memory_space<vmem>>, vector<256x128xf32>
    %cst = arith.constant dense<0.000000e+00> : vector<32x128xf32>
    %6 = tpu.matmul %4, %5, %cst {dimension_numbers = #tpu.dot_dimension_numbers<[1], [0], [0], [1], [0, 0, 1, 1], [], []>} : vector<32x256xf32>, vector<256x128xf32>, vector<32x128xf32> -> vector<32x128xf32>
    %7 = arith.addf %3, %6 : vector<32x128xf32>
    %c0_6 = arith.constant 0 : index
    %c0_7 = arith.constant 0 : index
    %8 = vector.load %arg8[%c0_6, %c0_7] : memref<32x128xf32, #tpu.memory_space<vmem>>, vector<32x128xf32>
    tpu.vector_store %arg8[%c0_6, %c0_7], %7 {strides = array<i32>} : memref<32x128xf32, #tpu.memory_space<vmem>>, vector<32x128xf32>,
    %c0_i32_8 = arith.constant 0 : i32
    %9 = arith.cmpi eq, %arg1, %c0_i32_8 : i32
    %10 = arith.extui %9 : i1 to i32
    %c0_i32_9 = arith.constant 0 : i32
    %11 = arith.cmpi ne, %10, %c0_i32_9 : i32
    scf.if %11 {
      %c0_10 = arith.constant 0 : index
      %c0_11 = arith.constant 0 : index
      %12 = vector.load %arg8[%c0_10, %c0_11] : memref<32x128xf32, #tpu.memory_space<vmem>>, vector<32x128xf32>
      %c0_12 = arith.constant 0 : index
      %c0_13 = arith.constant 0 : index
      %13 = vector.load %arg4[%c0_12, %c0_13] : memref<1x128xf32, #tpu.memory_space<vmem>>, vector<1x128xf32>
      %14 = vector.broadcast %13 : vector<1x128xf32> to vector<32x128xf32>
      %15 = arith.addf %12, %14 : vector<32x128xf32>
      %cst_14 = arith.constant 0.000000e+00 : f32
      %16 = vector.broadcast %cst_14 : f32 to vector<32x128xf32>
      %17 = arith.maximumf %15, %16 : vector<32x128xf32>
      %c0_15 = arith.constant 0 : index
      %c0_16 = arith.constant 0 : index
      %18 = vector.load %arg5[%c0_15, %c0_16] : memref<128x128xf32, #tpu.memory_space<vmem>>, vector<128x128xf32>
      %cst_17 = arith.constant dense<0.000000e+00> : vector<32x128xf32>
      %19 = tpu.matmul %17, %18, %cst_17 {dimension_numbers = #tpu.dot_dimension_numbers<[1], [0], [0], [1], [0, 0, 1, 1], [], []>} : vector<32x128xf32>, vector<128x128xf32>, vector<32x128xf32> -> vector<32x128xf32>
      %c0_18 = arith.constant 0 : index
      %c0_19 = arith.constant 0 : index
      %20 = vector.load %arg6[%c0_18, %c0_19] : memref<1x128xf32, #tpu.memory_space<vmem>>, vector<1x128xf32>
      %21 = vector.broadcast %20 : vector<1x128xf32> to vector<32x128xf32>
      %22 = arith.addf %19, %21 : vector<32x128xf32>
      %c0_20 = arith.constant 0 : index
      %c0_21 = arith.constant 0 : index
      %23 = vector.load %arg7[%c0_20, %c0_21] : memref<32x128xf32, #tpu.memory_space<vmem>>, vector<32x128xf32>
      tpu.vector_store %arg7[%c0_20, %c0_21], %22 {strides = array<i32>} : memref<32x128xf32, #tpu.memory_space<vmem>>, vector<32x128xf32>,
    } else {
    }
    return
  }
  func.func @transform_0(%arg0: i32, %arg1: i32) -> (i32, i32) {
    %c0_i32 = arith.constant 0 : i32
    return %arg0, %arg1 : i32, i32
  }
  func.func @transform_1(%arg0: i32, %arg1: i32) -> (i32, i32) {
    %c0_i32 = arith.constant 0 : i32
    %c0_i32_0 = arith.constant 0 : i32
    return %arg1, %c0_i32 : i32, i32
  }
  func.func @transform_2(%arg0: i32, %arg1: i32) -> (i32, i32) {
    %c0_i32 = arith.constant 0 : i32
    %c0_i32_0 = arith.constant 0 : i32
    %c0_i32_1 = arith.constant 0 : i32
    return %c0_i32, %c0_i32_0 : i32, i32
  }
  func.func @transform_3(%arg0: i32, %arg1: i32) -> (i32, i32) {
    %c0_i32 = arith.constant 0 : i32
    %c0_i32_0 = arith.constant 0 : i32
    %c0_i32_1 = arith.constant 0 : i32
    return %c0_i32, %c0_i32_0 : i32, i32
  }
  func.func @transform_4(%arg0: i32, %arg1: i32) -> (i32, i32) {
    %c0_i32 = arith.constant 0 : i32
    %c0_i32_0 = arith.constant 0 : i32
    %c0_i32_1 = arith.constant 0 : i32
    return %c0_i32, %c0_i32_0 : i32, i32
  }
  func.func @transform_5(%arg0: i32, %arg1: i32) -> (i32, i32) {
    %c0_i32 = arith.constant 0 : i32
    %c0_i32_0 = arith.constant 0 : i32
    return %arg0, %c0_i32 : i32, i32
  }
}

</mosaic_0001>

<bundles_post_ra>
// kernel: tpu_custom_call.1
= control target key start
LH: loop header
LB: loop body
LE: loop exit
PB: predicated region body
PF: predicated region fallthrough
CT: control target
= control target key end

     0   :  { %s1326_s0 = inlined_call_operand.hbm [shape: f32[64,256], index: 0, kind: input, shape index: {}]   ;;  %s1327_s1 = inlined_call_operand.hbm [shape: f32[256,128], index: 1, kind: input, shape index: {}]   ;;  %s1328_s2 = inlined_call_operand.vmem [shape: f32[1,128], index: 2, kind: input, shape index: {}]   ;;  %s1329_s3 = inlined_call_operand.hbm [shape: f32[128,128], index: 3, kind: input, shape index: {}]   ;;  %s1330_s4 = inlined_call_operand.vmem [shape: f32[1,128], index: 4, kind: input, shape index: {}]   ;;  %s1331_s5 = inlined_call_operand.hbm [shape: f32[64,128], index: 5, kind: output, shape index: {}]  }
   0x1   :  { %1335 = sst [smem:[#allocation13_spill]] %s1327_s1 }
   0x2   :  { %10 = vsyncpa [#allocation4], 0 }
   0x3   :  { %12 = vsyncpa [#allocation4 + $0x1], 0 }
   0x4   :  { %13 = vsyncpa [#allocation7], 0 }
   0x5   :  { %14 = vsyncpa [#allocation5], 0 }
   0x6   :  { %16 = vsyncpa [#allocation5 + $0x1], 0  ;;  %s1121_s18 = smov 0   ;;  %s1123_s19 = smov 0  }
   0x7   :  { %s1125_s20 = smov 0   ;;  %s1127_s21 = smov 0  }
   0x8   :  { %s1129_s22 = smov 0   ;;  %s1131_s23 = smov 0  }
   0x9 LB: > { %s699_s24 = sadd.s32 4294967295, %s1079_s23   ;;  %s700_s25 = sadd.s32 4294967294, %s1079_s23   ;;  %s1079_s23 = sphi %s1131_s23, %s22_s23   ;;  %s1075_s22 = sphi %s1129_s22, %s1353_s22   ;;  %s1071_s21 = sphi %s1127_s21, %s1352_s21   ;;  %s1067_s20 = sphi %s1125_s20, %s1351_s20   ;;  %s1063_s19 = sphi %s1123_s19, %s1350_s19   ;;  %s1059_s18 = sphi %s1121_s18, %s1349_s18  }
   0xa   : > { %p56_p0 = scmp.ne.s32.totalorder %s1063_s19, %s1059_s18  ;;  %p1155_p1 = scmp.eq.s32.totalorder %s699_s24, 0 }
   0xb   : > { %p1159_p2 = scmp.eq.s32.totalorder %s699_s24, 1  ;;  %p175_p3 = scmp.eq.s32.totalorder %s700_s25, 1 }
   0xc   : > { %s1336_s26 = scalar_select %p1155_p1, 1, 0 }
   0xd   : > { %p1165_p4 = por %p1155_p1, %p56_p0  ;;  %p701_p5 = scmp.ge.s32.totalorder %s1079_s23, 1 }
   0xe   : > { %p1170_p6 = por %p175_p3, %p56_p0  ;;  %p182_p7 = scmp.lt.s32.totalorder %s1079_s23, 3 }
   0xf   : > { %s1338_s28 = scalar_select %p1165_p4, 1, 0 }
  0x10   : > { %s1339_s29 = scalar_select %p1170_p6, 1, 0 }
  0x11   : > { %p1175_p8 = pnand %p701_p5, %p182_p7  ;;  %s1081_s6 = smov [#allocation6]  }
  0x12   : > { %s197_s7 = sshll.u32 %s1081_s6, 4  ;;  %s1082_s9 = smov [#allocation8]   ;;  %s198_s7 = int_to_ptr.vmem [resolvable:$true] %s197_s7 }
  0x13   : > { %p838_p9 = pneg %p1175_p8  ;;  %s213_s10 = sshll.u32 %s1082_s9, 4  ;;  %s214_s10 = int_to_ptr.vmem [resolvable:$true] %s213_s10 }
  0x14   : > { %s926_s11 = scalar_lea.vmem %s198_s7, 4096  ;;  %p934_p5 = scmp.lt.s32.totalorder %s198_s7, %s198_s7 }
  0x15   : > { %p1184_p11 = pnand %p838_p9, %p1155_p1  ;;  %p927_p13 = scmp.ne.s32.totalorder %s198_s7, %s926_s11 }
  0x16   : > { %p935_p7 = scmp.lt.s32.totalorder %s926_s11, %s926_s11 }
  0x17   : > { %p917_p12 = pneg %p1184_p11 }
  0x18   : > { %p936_p10 = por %p935_p7, %p934_p5 }
  0x19   : > { %p929_p0 = pnand %p927_p13, %p917_p12 }
  0x1b   : > { %p930_p3 = pneg %p929_p0 }
  0x1d   : > { %p937_p9 = pnand %p936_p10, %p930_p3 }
  0x1f   : > { %940 = shalt.err (!%p937_p9)
}
  0x20   : > { %s1083_s12 = smov 128   ;;  %s1084_s13 = smov 8  }
  0x21   : > { %s1342_s1 = sld [smem:[#allocation13_spill]]  ;;  %s952_s16 = scalar_lea.vmem %s214_s10, 2048 }
  0x22   : > { %p953_p6 = scmp.ne.s32.totalorder %s214_s10, %s952_s16  ;;  %p960_p1 = scmp.lt.s32.totalorder %s214_s10, %s214_s10 }
  0x23   : > { %p961_p4 = scmp.lt.s32.totalorder %s952_s16, %s952_s16 }
  0x24   : > { %p955_p13 = pnand %p953_p6, %p917_p12 }
  0x25   : > { %p962_p5 = por %p961_p4, %p960_p1 }
  0x26   : > { %p956_p0 = pneg %p955_p13 }
  0x27   : > { %841 = dma.hbm_to_vmem [thread:$0]  (!%p1184_p11), %s1342_s1, 4096, %s198_s7, [#allocation7], %s1083_s12, %s1083_s12, %s1084_s13  }
  0x28   : > { %p963_p10 = pnand %p962_p5, %p956_p0 }
  0x2a   : > { %966 = shalt.err (!%p963_p10)
}
  0x2b   : > { %844 = dma.hbm_to_vmem [thread:$0]  (!%p1184_p11), %s1329_s3, 2048, %s214_s10, [#allocation7], %s1083_s12, %s1083_s12, %s1084_s13  }
  0x2c   : > { %s34_s25 = sadd.s32 1, %s1075_s22  ;;  %s43_s6 = sadd.s32 1, %s1067_s20 }
  0x2d   : > { %p36_p1 = scmp.ge.s32.totalorder %s34_s25, 2  ;;  %p50_p4 = scmp.ne.s32.totalorder %s1067_s20, %s1063_s19 }
  0x2e   : > { %p51_p6 = scmp.eq.s32.totalorder %s1079_s23, 0  ;;  %p855_p12 = scmp.lt.s32.totalorder %s1079_s23, 2 }
  0x2f   : > { %s1355_s25 = smov (%p36_p1, %s34_s25), 0  ;;  %p1216_p7 = por %p1159_p2, %p50_p4 }
  0x30   : > { %p52_p3 = por %p51_p6, %p50_p4  ;;  %s38_s8 = ssub.s32 %s1075_s22, %s1355_s25 }
  0x31   : > { %s230_s9 = sand.u32 1, %s1067_s20   ;;  %p41_p9 = scmp.eq.s32.totalorder %s38_s8, 0 }
  0x32   : > { %s705_s10 = sshll.u32 %s230_s9, 6  ;;  %s722_s11 = sshll.u32 %s1075_s22, 10 }
  0x33   : > { %s1225_s12 = scalar_select %p41_p9, %s1067_s20, %s43_s6  }
  0x34   : > { %s243_s15 = scalar_lea.hbm %s1326_s0, %s722_s11  ;;  %s234_s16 = scalar_lea.vmem [#allocation3], %s705_s10 }
  0x35   : > { %s244_s17 = sshll.u32 %s234_s16, 4  ;;  %p1232_p11 = pnand %p855_p12, %p52_p3  ;;  %s245_s17 = int_to_ptr.vmem [resolvable:$true] %s244_s17 }
  0x36   : > { %s231_s24 = scalar_lea.sflag [#allocation4], %s230_s9  ;;  %s980_s8 = scalar_lea.vmem %s245_s17, 1024 }
  0x37   : > { %p969_p2 = pneg %p1232_p11  ;;  %p981_p13 = scmp.ne.s32.totalorder %s245_s17, %s980_s8 }
  0x38   : > { %s1085_s6 = smov [#allocation3]  }
  0x39   : > { %p983_p0 = pnand %p981_p13, %p969_p2  ;;  %s985_s1 = sshll.u32 %s1085_s6, 4  ;;  %s986_s1 = int_to_ptr.vmem [resolvable:$false] %s985_s1 }
  0x3a   : > { %s987_s11 = scalar_lea.vmem %s986_s1, 2048  ;;  %p988_p10 = scmp.lt.s32.totalorder %s245_s17, %s986_s1 }
  0x3b   : > { %p984_p5 = pneg %p983_p0  ;;  %p989_p1 = scmp.lt.s32.totalorder %s987_s11, %s980_s8 }
  0x3d   : > { %p990_p4 = por %p989_p1, %p988_p10 }
  0x3f   : > { %p991_p6 = pnand %p990_p4, %p984_p5 }
  0x41   : > { %994 = shalt.err (!%p991_p6)
}
  0x42   : > { %s1086_s10 = smov 256   ;;  %s1087_s13 = smov 16  }
  0x43   : > { %848 = dma.hbm_to_vmem [thread:$0]  (!%p1232_p11), %s243_s15, 1024, %s245_s17, %s231_s24, %s1086_s10, %s1086_s10, %s1087_s13  }
  0x44   : > { %256 = sbr.rel (%p1175_p8) target bundleno = 534 (0x216), region = 40  ;;  %s1243_s9 = sand.u32 (!%p1175_p8), 1, %s1063_s19  }
  0x45   : > { %s710_s14 = sshll.u32 (!%p1175_p8), %s1243_s9, 6  ;;  %s259_s1 = scalar_lea.sflag (!%p1175_p8), [#allocation4], %s1243_s9 }
  0x46   : > { %s1247_s16 = scalar_lea.vmem (!%p1175_p8), [#allocation3], %s710_s14  ;;  %p1345_p12 = scmp.ne.s32.totalorder (!%p1175_p8), %s1338_s28, 0 }
  0x49   : > { %1046 = dma.done.wait (%p1345_p12), %s259_s1, 1024  }
  0x4a   : > { %1048 = vsyncadd (%p1345_p12), %s259_s1, 4294966272  ;;  %p1346_p3 = scmp.ne.s32.totalorder %s1336_s26, 0 }
  0x4c   : > { %1050 = dma.done.wait (%p1346_p3), [#allocation7], 6144  }
  0x4d   : > { %1052 = vsyncadd (%p1346_p3), [#allocation7], 4294961152  ;;  %v352_v0 = vld [vmem:[#allocation6 + $0xf8] sm:$0xff]  ;;  %v351_v2 = vld [vmem:[#allocation6 + $0xf0] sm:$0xff]  ;;  %s713_s30 = sshll.u32 %s1243_s9, 5  ;;  %s723_s8 = sshll.u32 %s1071_s21, 9 }
  0x4e   : > { %v336_v1 = vld [vmem:[#allocation6 + $0x78] sm:$0xff]  ;;  %724 = vmatprep.subr.mxu0 %v352_v0  ;;  %v335_v3 = vld [vmem:[#allocation6 + $0x70] sm:$0xff]  ;;  %v350_v4 = vld [vmem:[#allocation6 + $0xe8] sm:$0xff]  ;;  %s296_s27 = scalar_lea.vmem [#allocation9], %s713_s30  ;;  %s1278_s10 = scalar_lea.hbm %s1331_s5, %s723_s8 }
  0x4f   : > { %725 = vmatpush3.msra.mxu0 %v336_v1  ;;  %v334_v5 = vld [vmem:[#allocation6 + $0x68] sm:$0xff]  ;;  %v349_v6 = vld [vmem:[#allocation6 + $0xe0] sm:$0xff]  ;;  %v348_v8 = vld [vmem:[#allocation6 + $0xd8] sm:$0xff]  ;;  %s594_s24 = sshll.u32 %s296_s27, 4  ;;  %s581_s13 = scalar_lea.sflag [#allocation5], %s1243_s9  ;;  %s1273_s24 = int_to_ptr.vmem [resolvable:$true] %s594_s24 }
  0x50   : > { %726 = vmatprep.subr.mxu0 %v351_v2  ;;  %v333_v7 = vld [vmem:[#allocation6 + $0x60] sm:$0xff]  ;;  %v332_v9 = vld [vmem:[#allocation6 + $0x58] sm:$0xff]  ;;  %v347_v10 = vld [vmem:[#allocation6 + $0xd0] sm:$0xff]  ;;  %s995_s14 = scalar_lea.vmem %s1273_s24, 512  ;;  %s1088_s21 = smov [#allocation9]  }
  0x51   : > { %727 = vmatpush3.msra.mxu0 %v335_v3  ;;  %v331_v11 = vld [vmem:[#allocation6 + $0x50] sm:$0xff]  ;;  %v346_v12 = vld [vmem:[#allocation6 + $0xc8] sm:$0xff]  ;;  %v345_v15 = vld [vmem:[#allocation6 + $0xc0] sm:$0xff]  ;;  %p996_p8 = scmp.ne.s32.totalorder %s1273_s24, %s995_s14  ;;  %s999_s1 = sshll.u32 %s1088_s21, 4  ;;  %s1000_s1 = int_to_ptr.vmem [resolvable:$false] %s999_s1 }
  0x52   : > { %728 = vmatprep.subr.mxu0 %v350_v4  ;;  %v314_v13 = vld [vmem:[%s1247_s16 + $0x8] sm:$0xff]  ;;  %v329_v16 = vld [vmem:[#allocation6 + $0x40] sm:$0xff]  ;;  %v483_v17 = vld [vmem:[#allocation8 + $0x78] sm:$0xff]  ;;  %p1002_p2 = scmp.lt.s32.totalorder %s1273_s24, %s1000_s1 }
  0x53   : > { %729 = vmatpush3.msra.mxu0 %v334_v5  ;;  %v330_v14 = vld [vmem:[#allocation6 + $0x48] sm:$0xff]  ;;  %417 = vmatprep.mubr.f32.mxu0 %v314_v13  ;;  %v482_v18 = vld [vmem:[#allocation8 + $0x70] sm:$0xff]  ;;  %v344_v19 = vld [vmem:[#allocation6 + $0xb8] sm:$0xff]  ;;  %p997_p9 = pnand %p996_p8, %p1216_p7 }
  0x54   : > { %730 = vmatprep.subr.mxu0 %v349_v6  ;;  %788 = vmatprep.subr.mxu1 %v483_v17  ;;  %v328_v20 = vld [vmem:[#allocation6 + $0x38] sm:$0xff]  ;;  %v481_v21 = vld [vmem:[#allocation8 + $0x68] sm:$0xff]  ;;  %v343_v22 = vld [vmem:[#allocation6 + $0xb0] sm:$0xff] }
  0x55   : > { %731 = vmatpush3.msra.mxu0 %v333_v7  ;;  %789 = vmatpush3.msra.mxu1 %v483_v17  ;;  %v327_v23 = vld [vmem:[#allocation6 + $0x30] sm:$0xff]  ;;  %v480_v24 = vld [vmem:[#allocation8 + $0x60] sm:$0xff]  ;;  %v342_v25 = vld [vmem:[#allocation6 + $0xa8] sm:$0xff]  ;;  %p998_p11 = pneg %p997_p9 }
  0x56   : > { %732 = vmatprep.subr.mxu0 %v348_v8  ;;  %790 = vmatprep.subr.mxu1 %v482_v18  ;;  %v326_v26 = vld [vmem:[#allocation6 + $0x28] sm:$0xff]  ;;  %v479_v27 = vld [vmem:[#allocation8 + $0x58] sm:$0xff]  ;;  %v341_v28 = vld [vmem:[#allocation6 + $0xa0] sm:$0xff] }
  0x57   : > { %733 = vmatpush3.msra.mxu0 %v332_v9  ;;  %791 = vmatpush3.msra.mxu1 %v482_v18  ;;  %v325_v29 = vld [vmem:[#allocation6 + $0x20] sm:$0xff]  ;;  %v478_v30 = vld [vmem:[#allocation8 + $0x50] sm:$0xff]  ;;  %v340_v31 = vld [vmem:[#allocation6 + $0x98] sm:$0xff] }
  0x58   : > { %734 = vmatprep.subr.mxu0 %v347_v10  ;;  %792 = vmatprep.subr.mxu1 %v481_v21  ;;  %v324_v32 = vld [vmem:[#allocation6 + $0x18] sm:$0xff]  ;;  %v477_v33 = vld [vmem:[#allocation8 + $0x48] sm:$0xff]  ;;  %v339_v34 = vld [vmem:[#allocation6 + $0x90] sm:$0xff] }
  0x59   : > { %735 = vmatpush3.msra.mxu0 %v331_v11  ;;  %793 = vmatpush3.msra.mxu1 %v481_v21  ;;  %v323_v35 = vld [vmem:[#allocation6 + $0x10] sm:$0xff]  ;;  %v476_v36 = vld [vmem:[#allocation8 + $0x40] sm:$0xff]  ;;  %v338_v37 = vld [vmem:[#allocation6 + $0x88] sm:$0xff] }
  0x5a   : > { %736 = vmatprep.subr.mxu0 %v346_v12  ;;  %794 = vmatprep.subr.mxu1 %v480_v24  ;;  %v322_v38 = vld [vmem:[#allocation6 + $0x8] sm:$0xff]  ;;  %v475_v39 = vld [vmem:[#allocation8 + $0x38] sm:$0xff]  ;;  %v337_v40 = vld [vmem:[#allocation6 + $0x80] sm:$0xff] }
  0x5b   : > { %737 = vmatpush3.msra.mxu0 %v330_v14  ;;  %795 = vmatpush3.msra.mxu1 %v480_v24  ;;  %v321_v41 = vld [vmem:[#allocation6] sm:$0xff]  ;;  %v474_v42 = vld [vmem:[#allocation8 + $0x30] sm:$0xff]  ;;  %v316_v44 = vld [vmem:[%s1247_s16 + $0x18] sm:$0xff] }
  0x5c   : > { %738 = vmatprep.subr.mxu0 %v345_v15  ;;  %796 = vmatprep.subr.mxu1 %v479_v27  ;;  %v313_v43 = vld [vmem:[%s1247_s16] sm:$0xff]  ;;  %v315_v45 = vld [vmem:[%s1247_s16 + $0x10] sm:$0xff]  ;;  %v318_v46 = vld [vmem:[%s1247_s16 + $0x28] sm:$0xff] }
  0x5d   : > { %739 = vmatpush3.msra.mxu0 %v329_v16  ;;  %797 = vmatpush3.msra.mxu1 %v479_v27  ;;  %v317_v47 = vld [vmem:[%s1247_s16 + $0x20] sm:$0xff]  ;;  %v320_v48 = vld [vmem:[%s1247_s16 + $0x38] sm:$0xff]  ;;  %v319_v49 = vld [vmem:[%s1247_s16 + $0x30] sm:$0xff]  ;;  %s1001_s16 = scalar_lea.vmem %s1000_s1, 1024 }
  0x5e   : > { %740 = vmatprep.subr.mxu0 %v344_v19  ;;  %798 = vmatprep.subr.mxu1 %v478_v30  ;;  %v473_v50 = vld [vmem:[#allocation8 + $0x28] sm:$0xff]  ;;  %v472_v51 = vld [vmem:[#allocation8 + $0x20] sm:$0xff]  ;;  %v471_v52 = vld [vmem:[#allocation8 + $0x18] sm:$0xff]  ;;  %p1003_p13 = scmp.lt.s32.totalorder %s1001_s16, %s995_s14 }
  0x5f   : > { %741 = vmatpush3.msra.mxu0 %v328_v20  ;;  %799 = vmatpush3.msra.mxu1 %v478_v30  ;;  %v470_v53 = vld [vmem:[#allocation8 + $0x10] sm:$0xff]  ;;  %v469_v54 = vld [vmem:[#allocation8 + $0x8] sm:$0xff]  ;;  %v468_v55 = vld [vmem:[#allocation8] sm:$0xff] }
  0x60   : > { %742 = vmatprep.subr.mxu0 %v343_v22  ;;  %800 = vmatprep.subr.mxu1 %v477_v33  ;;  %v714_v58 = vld [vmem:[%s1328_s2] ss:$0 sm:$0xff]  ;;  %p1004_p0 = por %p1003_p13, %p1002_p2 }
  0x61   : > { %743 = vmatpush3.msra.mxu0 %v327_v23  ;;  %801 = vmatpush3.msra.mxu1 %v477_v33  ;;  %v715_v13 = vld [vmem:[%s1330_s4] ss:$0 sm:$0xff] }
  0x62   : > { %744 = vmatprep.subr.mxu0 %v342_v25  ;;  %802 = vmatprep.subr.mxu1 %v476_v36  ;;  %p1005_p5 = pnand %p1004_p0, %p998_p11 }
  0x63   : > { %745 = vmatpush3.msra.mxu0 %v326_v26  ;;  %803 = vmatpush3.msra.mxu1 %v476_v36 }
  0x64   : > { %746 = vmatprep.subr.mxu0 %v341_v28  ;;  %804 = vmatprep.subr.mxu1 %v475_v39 }
  0x65   : > { %747 = vmatpush3.msra.mxu0 %v325_v29  ;;  %805 = vmatpush3.msra.mxu1 %v475_v39 }
  0x66   : > { %748 = vmatprep.subr.mxu0 %v340_v31  ;;  %806 = vmatprep.subr.mxu1 %v474_v42 }
  0x67   : > { %749 = vmatpush3.msra.mxu0 %v324_v32  ;;  %807 = vmatpush3.msra.mxu1 %v474_v42 }
  0x68   : > { %750 = vmatprep.subr.mxu0 %v339_v34  ;;  %808 = vmatprep.subr.mxu1 %v473_v50 }
  0x69   : > { %751 = vmatpush3.msra.mxu0 %v323_v35  ;;  %809 = vmatpush3.msra.mxu1 %v473_v50 }
  0x6a   : > { %752 = vmatprep.subr.mxu0 %v338_v37  ;;  %810 = vmatprep.subr.mxu1 %v472_v51 }
  0x6b   : > { %753 = vmatpush3.msra.mxu0 %v322_v38  ;;  %811 = vmatpush3.msra.mxu1 %v472_v51 }
  0x6c   : > { %754 = vmatprep.subr.mxu0 %v337_v40  ;;  %812 = vmatprep.subr.mxu1 %v471_v52 }
  0x6d   : > { %755 = vmatpush3.msra.mxu0 %v321_v41  ;;  %813 = vmatpush3.msra.mxu1 %v471_v52 }
  0x6e   : > { %418 = vmatmul.mubr.f32.vlgmr.msra.gmra.mxu0 %v313_v43  ;;  %814 = vmatprep.subr.mxu1 %v470_v53 }
  0x6f   : > { %422 = vmatprep.mubr.f32.mxu0 %v316_v44  ;;  %815 = vmatpush3.msra.mxu1 %v470_v53 }
  0x70   : > { %816 = vmatprep.subr.mxu1 %v469_v54 }
  0x71   : > { %817 = vmatpush3.msra.mxu1 %v469_v54 }
  0x72   : > { %423 = vmatmul.mubr.f32.gmra.mxu0 %v315_v45  ;;  %818 = vmatprep.subr.mxu1 %v468_v55 }
  0x73   : > { %427 = vmatprep.mubr.f32.mxu0 %v318_v46  ;;  %819 = vmatpush3.msra.mxu1 %v468_v55 }
  0x76   : > { %428 = vmatmul.mubr.f32.gmra.mxu0 %v317_v47 }
  0x77   : > { %432 = vmatprep.mubr.f32.mxu0 %v320_v48 }
  0x7a   : > { %433 = vmatmul.mubr.f32.gmra.mxu0 %v319_v49 }
 0x12e   : > { %v756_v56 = vpop.f32.mrf.mxu0 }
 0x130   : > { %v757_v57 = vpop.f32.mrf.mxu0 }
 0x131   : > { %v758_v59 = vadd.f32 %v757_v57, %v756_v56 }
 0x132   : > { %v759_v60 = vpop.f32.mrf.mxu0 }
 0x133   : > { %v460_v61 = vadd.f32 %v758_v59, %v714_v58 }
 0x134   : > { %v760_v62 = vpop.f32.mrf.mxu0 }
 0x135   : > { %v761_v63 = vadd.f32 %v760_v62, %v759_v60  ;;  %v464_v0 = vmax.f32 %v460_v61, 0.0 }
 0x136   : > { %v762_v1 = vpop.f32.mrf.mxu0 }
 0x137   : > { %v461_v2 = vadd.f32 %v761_v63, %v714_v58  ;;  %820 = vmatprep.mubr.f32.mxu1 %v464_v0 }
 0x138   : > { %v763_v3 = vpop.f32.mrf.mxu0 }
 0x139   : > { %v465_v4 = vmax.f32 %v461_v2, 0.0  ;;  %v764_v5 = vadd.f32 %v763_v3, %v762_v1 }
 0x13a   : > { %v765_v6 = vpop.f32.mrf.mxu0 }
 0x13b   : > { %v462_v7 = vadd.f32 %v764_v5, %v714_v58  ;;  %821 = vmatmul.mubr.f32.vlgmr.msra.gmra.mxu1 %v465_v4 }
 0x13c   : > { %v766_v8 = vpop.f32.mrf.mxu0 }
 0x13d   : > { %v466_v9 = vmax.f32 %v462_v7, 0.0  ;;  %v767_v10 = vadd.f32 %v766_v8, %v765_v6 }
 0x13f   : > { %v463_v11 = vadd.f32 %v767_v10, %v714_v58  ;;  %823 = vmatprep.mubr.f32.mxu1 %v466_v9 }
 0x141   : > { %v467_v12 = vmax.f32 %v463_v11, 0.0 }
 0x143   : > { %824 = vmatmul.mubr.f32.gmra.mxu1 %v467_v12 }
 0x1fb   : > { %v822_v14 = vpop.f32.mrf.mxu1 }
 0x1fc   : > { %v563_v15 = vadd.f32 %v822_v14, %v715_v13 }
 0x1fd   : > { %v557_v16 = vpop.f32.mrf.mxu1 }
 0x1fe   : > { %577 = vst [vmem:[%s296_s27 + $0x8] sm:$0xff] %v563_v15  ;;  %v558_v17 = vadd.f32 %v715_v13, %v557_v16 }
 0x200   : > { %576 = vst [vmem:[%s296_s27] sm:$0xff] %v558_v17 }
 0x203   : > { %v825_v18 = vpop.f32.mrf.mxu1 }
 0x204   : > { %v573_v19 = vadd.f32 %v825_v18, %v715_v13 }
 0x205   : > { %v567_v20 = vpop.f32.mrf.mxu1 }
 0x206   : > { %579 = vst [vmem:[%s296_s27 + $0x18] sm:$0xff] %v573_v19  ;;  %v568_v21 = vadd.f32 %v715_v13, %v567_v20 }
 0x208   : > { %578 = vst [vmem:[%s296_s27 + $0x10] sm:$0xff] %v568_v21 }
 0x209   : > { %1008 = shalt.err (!%p1005_p5)
}
 0x20a   : > { %s1009_s26 = scalar_lea.hbm %s1278_s10, 512  ;;  %s1013_s15 = scalar_lea.hbm %s1331_s5, 1024 }
 0x20b   : > { %p1010_p10 = scmp.ne.s32.totalorder %s1278_s10, %s1009_s26  ;;  %p1014_p6 = scmp.lt.s32.totalorder %s1278_s10, %s1331_s5 }
 0x20c   : > { %p1015_p12 = scmp.lt.s32.totalorder %s1013_s15, %s1009_s26 }
 0x20d   : > { %p1011_p1 = pnand %p1010_p10, %p1216_p7 }
 0x20e   : > { %p1016_p3 = por %p1015_p12, %p1014_p6 }
 0x20f   : > { %p1012_p4 = pneg %p1011_p1 }
 0x211   : > { %p1017_p8 = pnand %p1016_p3, %p1012_p4 }
 0x213   : > { %1020 = shalt.err (!%p1017_p8)
}
 0x214   : > { %s1089_s8 = smov 128   ;;  %s1090_s6 = smov 8  }
 0x215   : > { %836 = dma.vmem_to_hbm [thread:$0]  (%p1216_p7), %s1273_s24, 512, %s1278_s10, %s581_s13, %s1089_s8, %s1089_s8, %s1090_s6  }
 0x216 PF: > { %s609_s11 = sand.u32 1, %s1059_s18   ;;  %p1347_p9 = scmp.ne.s32.totalorder %s1339_s29, 0 }
 0x217   : > { %p1348_p11 = scmp.ge.s32.totalorder %s1079_s23, 2  ;;  %s610_s14 = scalar_lea.sflag [#allocation5], %s609_s11 }
 0x219   : > { %p850_p2 = pnand %p1348_p11, %p1347_p9 }
 0x21b   : > { %p851_p13 = pneg %p850_p2 }
 0x21d   : > { %1054 = dma.done.wait (%p851_p13), %s610_s14, 512  }
 0x21e   : > { %1056 = vsyncadd (%p851_p13), %s610_s14, 4294966784  ;;  %s22_s23 = sadd.s32 1, %s1079_s23   ;;  %s1349_s18 = smov %s1063_s19 }
 0x21f   : > { %p19_p0 = scmp.ge.s32.totalorder %s22_s23, 4   ;;  %s1350_s19 = smov %s1067_s20 }
 0x220   : > { %s1351_s20 = smov %s1225_s12  ;;  %s1352_s21 = smov %s1075_s22 }
 0x221   : > { %s1353_s22 = smov %s1355_s25  ;;  %21 = sbr.rel (!%p19_p0) target bundleno = 9 (0x9), region = 102 }
 0x226   :  { %615 = vsyncpa [#allocation4], 1 }
 0x227   :  { %617 = vsyncpa [#allocation4 + $0x1], 1 }
 0x228   :  { %618 = vsyncpa [#allocation7], 1 }
 0x229   :  { %619 = vsyncpa [#allocation5], 1 }
 0x22a   :  { %621 = vsyncpa [#allocation5 + $0x1], 1 }

</bundles_post_ra>
